<compile_context>
chip_gen: v7x
topology: tpu7x:2x2x1
jax: 0.10.0
libtpu: 0.0.40
codegen_flags: <defaults>
</compile_context>

<pallas_src>
import functools

import jax
import jax.numpy as jnp
from jax.experimental import pallas as pl
from jax.experimental.pallas import tpu as pltpu


def _round_up(v, m):
    return ((v + m - 1) // m) * m


def _default_vmem_limit():
    # min(100 MiB, 3/4 physical): ~96 MiB on v5e/v6e (128 MiB), 48 MiB on v7x (64 MiB).
    try:
        cap = int(pltpu.get_tpu_info().vmem_capacity_bytes)
    except Exception:  # pragma: no cover - conservative fallback
        cap = 64 * 1024 * 1024
    return int(min(100 * 1024 * 1024, cap * 3 // 4))


def _ffn_ln_kernel(x_ref, w1_ref, b1_ref, w2_ref, b2_ref, g_ref, beta_ref,
                   o_ref, acc_ref, *, d_model, matmul_dtype):
    k = pl.program_id(1)
    nk = pl.num_programs(1)

    @pl.when(k == 0)
    def _():
        acc_ref[...] = jnp.zeros_like(acc_ref)

    # Load the x tile once; derive both views from the single load.
    xr = x_ref[...]                                   # (tm, dp), input dtype
    xm = xr.astype(matmul_dtype)

    # Linear 1 (this d_ffn slice) -> bias -> ReLU, fused downcast so only the
    # matmul-dtype copy of h is live.
    h = jnp.dot(xm, w1_ref[...], preferred_element_type=jnp.float32)
    h = jnp.maximum(h + b1_ref[...], 0.0).astype(matmul_dtype)   # (tm, tk)

    # Linear 2 partial product, accumulated in f32 VMEM scratch.
    acc_ref[...] += jnp.dot(h, w2_ref[...], preferred_element_type=jnp.float32)

    @pl.when(k == nk - 1)
    def _():
        # Dropout (eval mode -> identity) + residual + output bias.
        z = xr.astype(jnp.float32) + acc_ref[...] + b2_ref[...]   # (tm, dp) f32

        # LayerNorm over the true d_model lanes (eps = torch default 1e-5).
        dp = z.shape[-1]
        inv_d = 1.0 / d_model
        mean = jnp.sum(z, axis=-1, keepdims=True) * inv_d  # padded lanes of z are 0
        diff = z - mean
        if dp != d_model:
            # Exclude padded lanes from the (two-pass) variance.
            lane = jax.lax.broadcasted_iota(jnp.int32, z.shape, 1)
            diff_v = jnp.where(lane < d_model, diff, 0.0)
        else:
            diff_v = diff
        var = jnp.sum(diff_v * diff_v, axis=-1, keepdims=True) * inv_d
        zn = diff * jax.lax.rsqrt(var + 1e-5)
        # gamma/beta are zero-padded, so padded output lanes are 0 and get sliced off.
        o_ref[...] = (zn * g_ref[...] + beta_ref[...]).astype(o_ref.dtype)


def prepare_ffn_params(w1, b1, w2, b2, gamma, beta, *,
                       matmul_dtype=jnp.bfloat16, tk_ffn=512):
    """Pad params to lane-aligned (multiple-of-128) shapes and cast the weights
    to the MXU dtype ONCE.  Cache the returned dict and reuse it across calls."""
    d_model, d_ffn = w1.shape
    dp = _round_up(d_model, 128)
    tk = min(_round_up(tk_ffn, 128), _round_up(d_ffn, 128))
    fp = _round_up(d_ffn, tk)            # pad d_ffn so the k-axis tiles evenly

    def pad2(a, rows, cols):
        return jnp.pad(a, ((0, rows - a.shape[0]), (0, cols - a.shape[1])))

    return dict(
        d_model=d_model, d_ffn=d_ffn, dp=dp, fp=fp, tk=tk,
        matmul_dtype=matmul_dtype,
        w1=pad2(w1.astype(jnp.float32), dp, fp).astype(matmul_dtype),
        b1=pad2(b1.reshape(1, d_ffn).astype(jnp.float32), 1, fp),
        w2=pad2(w2.astype(jnp.float32), fp, dp).astype(matmul_dtype),
        b2=pad2(b2.reshape(1, d_model).astype(jnp.float32), 1, dp),
        gamma=pad2(gamma.reshape(1, d_model).astype(jnp.float32), 1, dp),
        beta=pad2(beta.reshape(1, d_model).astype(jnp.float32), 1, dp),
    )


def feed_forward_net(x, params, *, tile_m=512, vmem_limit_bytes=None):
    """x: (batch, seq, d_model). params: output of prepare_ffn_params.
    Returns same shape/dtype as x."""
    B, S, d_model = x.shape
    assert d_model == params["d_model"]
    dp, fp, tk = params["dp"], params["fp"], params["tk"]
    d_ffn = params["d_ffn"]
    matmul_dtype = params["matmul_dtype"]

    N = B * S
    x2 = x.reshape(N, d_model)
    if dp != d_model:
        x2 = jnp.pad(x2, ((0, 0), (0, dp - d_model)))   # lane-dense input/output slab

    # Row tile: as large as requested, clamped to the row count; make sure the
    # M axis has >=2 grid steps whenever possible so both v7x TensorCores work.
    tm = min(_round_up(tile_m, 8), _round_up(N, 8))
    if N > 8 and pl.cdiv(N, tm) < 2:
        tm = _round_up(pl.cdiv(N, 2), 8)
    tm = max(8, tm)

    grid = (pl.cdiv(N, tm), fp // tk)   # reduction (d_ffn) axis last, "arbitrary"

    if vmem_limit_bytes is None:
        vmem_limit_bytes = _default_vmem_limit()

    kernel = functools.partial(_ffn_ln_kernel, d_model=d_model,
                               matmul_dtype=matmul_dtype)

    itemsize_w = jnp.dtype(matmul_dtype).itemsize
    cost = pl.CostEstimate(
        flops=4 * N * d_model * d_ffn,
        transcendentals=N,
        bytes_accessed=(2 * N * dp * x.dtype.itemsize
                        + 2 * dp * fp * itemsize_w
                        + (fp + 3 * dp) * 4),
    )

    out = pl.pallas_call(
        kernel,
        out_shape=jax.ShapeDtypeStruct((N, dp), x.dtype),
        grid_spec=pltpu.PrefetchScalarGridSpec(
            num_scalar_prefetch=0,
            grid=grid,
            in_specs=[
                pl.BlockSpec((tm, dp), lambda i, k: (i, 0)),    # x rows (const over k)
                pl.BlockSpec((dp, tk), lambda i, k: (0, k)),    # W1 k-slice
                pl.BlockSpec((1, tk), lambda i, k: (0, k)),     # b1 k-slice
                pl.BlockSpec((tk, dp), lambda i, k: (k, 0)),    # W2 k-slice
                pl.BlockSpec((1, dp), lambda i, k: (0, 0)),     # b2
                pl.BlockSpec((1, dp), lambda i, k: (0, 0)),     # LN gamma
                pl.BlockSpec((1, dp), lambda i, k: (0, 0)),     # LN beta
            ],
            out_specs=pl.BlockSpec((tm, dp), lambda i, k: (i, 0)),
            scratch_shapes=[pltpu.VMEM((tm, dp), jnp.float32)],  # y accumulator
        ),
        compiler_params=pltpu.CompilerParams(
            dimension_semantics=("parallel", "arbitrary"),
            vmem_limit_bytes=vmem_limit_bytes,
        ),
        cost_estimate=cost,
    )(x2, params["w1"], params["b1"], params["w2"], params["b2"],
      params["gamma"], params["beta"])

    if dp != d_model:
        out = out[:, :d_model]
    return out.reshape(B, S, d_model)


def _reference(x, w1, b1, w2, b2, gamma, beta):
    h = jnp.maximum(x @ w1 + b1, 0.0)
    y = h @ w2 + b2
    z = x + y
    mean = jnp.mean(z, axis=-1, keepdims=True)
    var = jnp.mean((z - mean) ** 2, axis=-1, keepdims=True)
    return ((z - mean) / jnp.sqrt(var + 1e-5)) * gamma + beta


if __name__ == "__main__":
    # Small shapes consistent with the module: X is (batch, seq, d_model).
    batch, seq, d_model, d_ffn = 2, 8, 32, 64

    key = jax.random.PRNGKey(0)
    kx, k1, k2, k3, k4 = jax.random.split(key, 5)

    x = jax.random.normal(kx, (batch, seq, d_model), dtype=jnp.float32)

    # Deterministic param init (PyTorch Linear weight is (out, in); stored (in, out)).
    w1 = jax.random.normal(k1, (d_model, d_ffn), dtype=jnp.float32) * (1.0 / jnp.sqrt(d_model))
    b1 = jax.random.normal(k2, (d_ffn,), dtype=jnp.float32) * 0.01
    w2 = jax.random.normal(k3, (d_ffn, d_model), dtype=jnp.float32) * (1.0 / jnp.sqrt(d_ffn))
    b2 = jax.random.normal(k4, (d_model,), dtype=jnp.float32) * 0.01
    gamma = jnp.ones((d_model,), dtype=jnp.float32)
    beta = jnp.zeros((d_model,), dtype=jnp.float32)

    ref = _reference(x, w1, b1, w2, b2, gamma, beta)

    # 1) Exact-semantics path (f32 MXU operands): tight tolerance.
    p_f32 = prepare_ffn_params(w1, b1, w2, b2, gamma, beta, matmul_dtype=jnp.float32)
    out_f32 = jax.block_until_ready(feed_forward_net(x, p_f32))
    assert out_f32.shape == (batch, seq, d_model)
    assert jnp.allclose(out_f32, ref, atol=1e-4, rtol=1e-4), "f32 path mismatch"

    # 2) Performance path (bf16 MXU operands, f32 accumulate/epilogue).
    p_bf16 = prepare_ffn_params(w1, b1, w2, b2, gamma, beta, matmul_dtype=jnp.bfloat16)
    out_bf16 = jax.block_until_ready(feed_forward_net(x, p_bf16))
    assert out_bf16.shape == (batch, seq, d_model)
    assert jnp.allclose(out_bf16, ref, atol=5e-2, rtol=5e-2), "bf16 path mismatch"

    print("KERNEL_OK")
</pallas_src>

<mosaic_0001>
module attributes {stable_mosaic.version = 11 : i64} {
  func.func @_ffn_ln_kernel(%arg0: i32, %arg1: i32, %arg2: memref<8x128xf32, #tpu.memory_space<vmem>>, %arg3: memref<128x128xf32, #tpu.memory_space<vmem>>, %arg4: memref<1x128xf32, #tpu.memory_space<vmem>>, %arg5: memref<128x128xf32, #tpu.memory_space<vmem>>, %arg6: memref<1x128xf32, #tpu.memory_space<vmem>>, %arg7: memref<1x128xf32, #tpu.memory_space<vmem>>, %arg8: memref<1x128xf32, #tpu.memory_space<vmem>>, %arg9: memref<8x128xf32, #tpu.memory_space<vmem>>, %arg10: memref<8x128xf32, #tpu.memory_space<vmem>>) attributes {dimension_semantics = [#tpu.dimension_semantics<parallel>, #tpu.dimension_semantics<arbitrary>], iteration_bounds = array<i64: 2, 1>, scalar_prefetch = 0 : i64, scratch_operands = 1 : i64, tpu.core_type = #tpu.core_type<tc>, window_params = [{transform_indices = @transform_0, window_bounds = array<i64: 8, 128>}, {transform_indices = @transform_1, window_bounds = array<i64: 128, 128>}, {transform_indices = @transform_2, window_bounds = array<i64: 1, 128>}, {transform_indices = @transform_3, window_bounds = array<i64: 128, 128>}, {pipeline_mode = #tpu.pipeline_mode<synchronous>, transform_indices = @transform_4, window_bounds = array<i64: 1, 128>}, {pipeline_mode = #tpu.pipeline_mode<synchronous>, transform_indices = @transform_5, window_bounds = array<i64: 1, 128>}, {pipeline_mode = #tpu.pipeline_mode<synchronous>, transform_indices = @transform_6, window_bounds = array<i64: 1, 128>}, {transform_indices = @transform_7, window_bounds = array<i64: 8, 128>}]} {
    %c0_i32 = arith.constant 0 : i32
    %0 = arith.cmpi eq, %arg1, %c0_i32 : i32
    %1 = arith.extui %0 : i1 to i32
    %c0_i32_0 = arith.constant 0 : i32
    %2 = arith.cmpi ne, %1, %c0_i32_0 : i32
    scf.if %2 {
      %cst_16 = arith.constant 0.000000e+00 : f32
      %19 = vector.broadcast %cst_16 : f32 to vector<8x128xf32>
      %c0_17 = arith.constant 0 : index
      %c0_18 = arith.constant 0 : index
      %20 = vector.load %arg10[%c0_17, %c0_18] : memref<8x128xf32, #tpu.memory_space<vmem>>, vector<8x128xf32>
      tpu.vector_store %arg10[%c0_17, %c0_18], %19 {strides = array<i32>} : memref<8x128xf32, #tpu.memory_space<vmem>>, vector<8x128xf32>,
    } else {
    }
    %c0 = arith.constant 0 : index
    %c0_1 = arith.constant 0 : index
    %3 = vector.load %arg2[%c0, %c0_1] : memref<8x128xf32, #tpu.memory_space<vmem>>, vector<8x128xf32>
    %c0_2 = arith.constant 0 : index
    %c0_3 = arith.constant 0 : index
    %4 = vector.load %arg3[%c0_2, %c0_3] : memref<128x128xf32, #tpu.memory_space<vmem>>, vector<128x128xf32>
    %cst = arith.constant dense<0.000000e+00> : vector<8x128xf32>
    %5 = tpu.matmul %3, %4, %cst {dimension_numbers = #tpu.dot_dimension_numbers<[1], [0], [0], [1], [0, 0, 1, 1], [], []>} : vector<8x128xf32>, vector<128x128xf32>, vector<8x128xf32> -> vector<8x128xf32>
    %c0_4 = arith.constant 0 : index
    %c0_5 = arith.constant 0 : index
    %6 = vector.load %arg4[%c0_4, %c0_5] : memref<1x128xf32, #tpu.memory_space<vmem>>, vector<1x128xf32>
    %7 = vector.broadcast %6 : vector<1x128xf32> to vector<8x128xf32>
    %8 = arith.addf %5, %7 : vector<8x128xf32>
    %cst_6 = arith.constant 0.000000e+00 : f32
    %9 = vector.broadcast %cst_6 : f32 to vector<8x128xf32>
    %10 = arith.maximumf %8, %9 : vector<8x128xf32>
    %c0_7 = arith.constant 0 : index
    %c0_8 = arith.constant 0 : index
    %11 = vector.load %arg10[%c0_7, %c0_8] : memref<8x128xf32, #tpu.memory_space<vmem>>, vector<8x128xf32>
    %c0_9 = arith.constant 0 : index
    %c0_10 = arith.constant 0 : index
    %12 = vector.load %arg5[%c0_9, %c0_10] : memref<128x128xf32, #tpu.memory_space<vmem>>, vector<128x128xf32>
    %cst_11 = arith.constant dense<0.000000e+00> : vector<8x128xf32>
    %13 = tpu.matmul %10, %12, %cst_11 {dimension_numbers = #tpu.dot_dimension_numbers<[1], [0], [0], [1], [0, 0, 1, 1], [], []>} : vector<8x128xf32>, vector<128x128xf32>, vector<8x128xf32> -> vector<8x128xf32>
    %14 = arith.addf %11, %13 : vector<8x128xf32>
    %c0_12 = arith.constant 0 : index
    %c0_13 = arith.constant 0 : index
    %15 = vector.load %arg10[%c0_12, %c0_13] : memref<8x128xf32, #tpu.memory_space<vmem>>, vector<8x128xf32>
    tpu.vector_store %arg10[%c0_12, %c0_13], %14 {strides = array<i32>} : memref<8x128xf32, #tpu.memory_space<vmem>>, vector<8x128xf32>,
    %c0_i32_14 = arith.constant 0 : i32
    %16 = arith.cmpi eq, %arg1, %c0_i32_14 : i32
    %17 = arith.extui %16 : i1 to i32
    %c0_i32_15 = arith.constant 0 : i32
    %18 = arith.cmpi ne, %17, %c0_i32_15 : i32
    scf.if %18 {
      %c0_16 = arith.constant 0 : index
      %c0_17 = arith.constant 0 : index
      %19 = vector.load %arg10[%c0_16, %c0_17] : memref<8x128xf32, #tpu.memory_space<vmem>>, vector<8x128xf32>
      %20 = arith.addf %3, %19 : vector<8x128xf32>
      %c0_18 = arith.constant 0 : index
      %c0_19 = arith.constant 0 : index
      %21 = vector.load %arg6[%c0_18, %c0_19] : memref<1x128xf32, #tpu.memory_space<vmem>>, vector<1x128xf32>
      %22 = vector.broadcast %21 : vector<1x128xf32> to vector<8x128xf32>
      %23 = arith.addf %20, %22 : vector<8x128xf32>
      %cst_20 = arith.constant dense<0.000000e+00> : vector<8xf32>
      %24 = vector.multi_reduction <add>, %23, %cst_20 [1] : vector<8x128xf32> to vector<8xf32>
      %25 = vector.shape_cast %24 : vector<8xf32> to vector<8x1xf32>
      %cst_21 = arith.constant 3.125000e-02 : f32
      %26 = vector.broadcast %cst_21 : f32 to vector<8x1xf32>
      %27 = arith.mulf %25, %26 : vector<8x1xf32>
      %28 = vector.broadcast %27 : vector<8x1xf32> to vector<8x128xf32>
      %29 = arith.subf %23, %28 : vector<8x128xf32>
      %30 = tpu.iota {dimensions = array<i32: 1>} : vector<8x128xi32>
      %c32_i32 = arith.constant 32 : i32
      %31 = vector.broadcast %c32_i32 : i32 to vector<8x128xi32>
      %32 = arith.cmpi slt, %30, %31 : vector<8x128xi32>
      %cst_22 = arith.constant 0.000000e+00 : f32
      %33 = vector.broadcast %cst_22 : f32 to vector<8x128xf32>
      %34 = arith.select %32, %29, %33 : vector<8x128xi1>, vector<8x128xf32>
      %35 = arith.mulf %34, %34 : vector<8x128xf32>
      %cst_23 = arith.constant dense<0.000000e+00> : vector<8xf32>
      %36 = vector.multi_reduction <add>, %35, %cst_23 [1] : vector<8x128xf32> to vector<8xf32>
      %37 = vector.shape_cast %36 : vector<8xf32> to vector<8x1xf32>
      %cst_24 = arith.constant 3.125000e-02 : f32
      %38 = vector.broadcast %cst_24 : f32 to vector<8x1xf32>
      %39 = arith.mulf %37, %38 : vector<8x1xf32>
      %cst_25 = arith.constant 9.99999974E-6 : f32
      %40 = vector.broadcast %cst_25 : f32 to vector<8x1xf32>
      %41 = arith.addf %39, %40 : vector<8x1xf32>
      %42 = math.rsqrt %41 : vector<8x1xf32>
      %43 = vector.broadcast %42 : vector<8x1xf32> to vector<8x128xf32>
      %44 = arith.mulf %29, %43 : vector<8x128xf32>
      %c0_26 = arith.constant 0 : index
      %c0_27 = arith.constant 0 : index
      %45 = vector.load %arg7[%c0_26, %c0_27] : memref<1x128xf32, #tpu.memory_space<vmem>>, vector<1x128xf32>
      %46 = vector.broadcast %45 : vector<1x128xf32> to vector<8x128xf32>
      %47 = arith.mulf %44, %46 : vector<8x128xf32>
      %c0_28 = arith.constant 0 : index
      %c0_29 = arith.constant 0 : index
      %48 = vector.load %arg8[%c0_28, %c0_29] : memref<1x128xf32, #tpu.memory_space<vmem>>, vector<1x128xf32>
      %49 = vector.broadcast %48 : vector<1x128xf32> to vector<8x128xf32>
      %50 = arith.addf %47, %49 : vector<8x128xf32>
      %c0_30 = arith.constant 0 : index
      %c0_31 = arith.constant 0 : index
      %51 = vector.load %arg9[%c0_30, %c0_31] : memref<8x128xf32, #tpu.memory_space<vmem>>, vector<8x128xf32>
      tpu.vector_store %arg9[%c0_30, %c0_31], %50 {strides = array<i32>} : memref<8x128xf32, #tpu.memory_space<vmem>>, vector<8x128xf32>,
    } else {
    }
    return
  }
  func.func @transform_0(%arg0: i32, %arg1: i32) -> (i32, i32) {
    %c0_i32 = arith.constant 0 : i32
    %c0_i32_0 = arith.constant 0 : i32
    return %arg0, %c0_i32 : i32, i32
  }
  func.func @transform_1(%arg0: i32, %arg1: i32) -> (i32, i32) {
    %c0_i32 = arith.constant 0 : i32
    %c0_i32_0 = arith.constant 0 : i32
    return %c0_i32, %arg1 : i32, i32
  }
  func.func @transform_2(%arg0: i32, %arg1: i32) -> (i32, i32) {
    %c0_i32 = arith.constant 0 : i32
    %c0_i32_0 = arith.constant 0 : i32
    return %c0_i32, %arg1 : i32, i32
  }
  func.func @transform_3(%arg0: i32, %arg1: i32) -> (i32, i32) {
    %c0_i32 = arith.constant 0 : i32
    %c0_i32_0 = arith.constant 0 : i32
    return %arg1, %c0_i32 : i32, i32
  }
  func.func @transform_4(%arg0: i32, %arg1: i32) -> (i32, i32) {
    %c0_i32 = arith.constant 0 : i32
    %c0_i32_0 = arith.constant 0 : i32
    %c0_i32_1 = arith.constant 0 : i32
    return %c0_i32, %c0_i32_0 : i32, i32
  }
  func.func @transform_5(%arg0: i32, %arg1: i32) -> (i32, i32) {
    %c0_i32 = arith.constant 0 : i32
    %c0_i32_0 = arith.constant 0 : i32
    %c0_i32_1 = arith.constant 0 : i32
    return %c0_i32, %c0_i32_0 : i32, i32
  }
  func.func @transform_6(%arg0: i32, %arg1: i32) -> (i32, i32) {
    %c0_i32 = arith.constant 0 : i32
    %c0_i32_0 = arith.constant 0 : i32
    %c0_i32_1 = arith.constant 0 : i32
    return %c0_i32, %c0_i32_0 : i32, i32
  }
  func.func @transform_7(%arg0: i32, %arg1: i32) -> (i32, i32) {
    %c0_i32 = arith.constant 0 : i32
    %c0_i32_0 = arith.constant 0 : i32
    return %arg0, %c0_i32 : i32, i32
  }
}

</mosaic_0001>

<bundles_post_ra>
// kernel: tpu_custom_call.1
= control target key start
LH: loop header
LB: loop body
LE: loop exit
PB: predicated region body
PF: predicated region fallthrough
CT: control target
= control target key end

     0   :  { %12 = vsyncpa [#allocation4], 0  ;;  %s1498_s0 = inlined_call_operand.hbm [shape: f32[16,128], index: 0, kind: input, shape index: {}]   ;;  %s1499_s1 = inlined_call_operand.hbm [shape: f32[128,128], index: 1, kind: input, shape index: {}]   ;;  %s1500_s2 = inlined_call_operand.vmem [shape: f32[1,128], index: 2, kind: input, shape index: {}]   ;;  %s1501_s3 = inlined_call_operand.hbm [shape: f32[128,128], index: 3, kind: input, shape index: {}]   ;;  %s1502_s4 = inlined_call_operand.vmem [shape: f32[1,128], index: 4, kind: input, shape index: {}]   ;;  %s1503_s5 = inlined_call_operand.vmem [shape: f32[1,128], index: 5, kind: input, shape index: {}]   ;;  %s1504_s6 = inlined_call_operand.vmem [shape: f32[1,128], index: 6, kind: input, shape index: {}]   ;;  %s1505_s7 = inlined_call_operand.hbm [shape: f32[16,128], index: 7, kind: output, shape index: {}]  }
   0x1   :  { %14 = vsyncpa [#allocation4 + $0x1], 0 }
   0x2   :  { %15 = vsyncpa [#allocation7], 0 }
   0x3   :  { %16 = vsyncpa [#allocation5], 0 }
   0x4   :  { %18 = vsyncpa [#allocation5 + $0x1], 0  ;;  %s1213_s24 = smov 0   ;;  %s1215_s25 = smov 0  }
   0x5   :  { %s1217_s26 = smov 0   ;;  %s1219_s27 = smov 0  }
   0x6   :  { %s1221_s28 = smov 0   ;;  %s1223_s29 = smov 0  }
   0x7 LB: > { %1512 = sst [smem:[#allocation13_spill]] %s1142_s24  ;;  %s726_s30 = sadd.s32 4294967295, %s1162_s29   ;;  %s1162_s29 = sphi %s1223_s29, %s24_s29   ;;  %s1158_s28 = sphi %s1221_s28, %s1533_s28   ;;  %s1154_s27 = sphi %s1219_s27, %s1532_s27   ;;  %s1150_s26 = sphi %s1217_s26, %s1531_s26   ;;  %s1146_s25 = sphi %s1215_s25, %s1530_s25   ;;  %s1142_s24 = sphi %s1213_s24, %s1529_s24  }
   0x8   : > { %s727_s8 = sadd.s32 4294967294, %s1162_s29   ;;  %p56_p0 = scmp.ne.s32.totalorder %s1146_s25, %s1142_s24 }
   0x9   : > { %p1247_p1 = scmp.eq.s32.totalorder %s726_s30, 0  ;;  %p1251_p2 = scmp.eq.s32.totalorder %s726_s30, 1 }
   0xa   : > { %p227_p3 = scmp.eq.s32.totalorder %s727_s8, 1  ;;  %p728_p5 = scmp.ge.s32.totalorder %s1162_s29, 1 }
   0xb   : > { %s1513_s9 = scalar_select %p1247_p1, 1, 0 }
   0xc   : > { %p1257_p4 = por %p1247_p1, %p56_p0  ;;  %p1262_p6 = por %p227_p3, %p56_p0 }
   0xd   : > { %p234_p7 = scmp.lt.s32.totalorder %s1162_s29, 3  ;;  %s1164_s14 = smov [#allocation6]  }
   0xe   : > { %s1515_s11 = scalar_select %p1257_p4, 1, 0 }
   0xf   : > { %s1516_s12 = scalar_select %p1262_p6, 1, 0 }
  0x10   : > { %p1267_p8 = pnand %p728_p5, %p234_p7  ;;  %s248_s15 = sshll.u32 %s1164_s14, 4  ;;  %s1271_s15 = int_to_ptr.vmem [resolvable:$true] %s248_s15 }
  0x11   : > { %1517 = sst [smem:[#allocation14_spill]] %s1516_s12  ;;  %s1165_s17 = smov [#allocation8]  }
  0x12   : > { %p912_p9 = pneg %p1267_p8  ;;  %s270_s18 = sshll.u32 %s1165_s17, 4  ;;  %s1282_s18 = int_to_ptr.vmem [resolvable:$true] %s270_s18 }
  0x13   : > { %s990_s21 = scalar_lea.hbm %s1499_s1, 2048 }
  0x14   : > { %p1278_p11 = pnand %p912_p9, %p1247_p1  ;;  %p991_p12 = scmp.ne.s32.totalorder %s1499_s1, %s990_s21 }
  0x15   : > { %p997_p5 = scmp.lt.u32.totalorder %s990_s21, %s1499_s1 }
  0x16   : > { %p992_p13 = pneg %p1278_p11 }
  0x18   : > { %p993_p0 = pnand %p992_p13, %p991_p12 }
  0x1a   : > { %p994_p3 = pneg %p993_p0 }
  0x1c   : > { %p999_p7 = pnand %p997_p5, %p994_p3 }
  0x1e   : > { %1002 = shalt.err (!%p999_p7)
}
  0x1f   : > { %s1003_s14 = scalar_lea.vmem %s1271_s15, 2048  ;;  %p1011_p1 = scmp.lt.s32.totalorder %s1271_s15, %s1271_s15 }
  0x20   : > { %p1004_p9 = scmp.ne.s32.totalorder %s1271_s15, %s1003_s14  ;;  %p1012_p12 = scmp.lt.s32.totalorder %s1003_s14, %s1003_s14 }
  0x22   : > { %p1006_p10 = pnand %p1004_p9, %p992_p13  ;;  %p1013_p0 = por %p1012_p12, %p1011_p1 }
  0x24   : > { %p1007_p6 = pneg %p1006_p10 }
  0x26   : > { %p1014_p4 = pnand %p1013_p0, %p1007_p6 }
  0x28   : > { %1017 = shalt.err (!%p1014_p4)
}
  0x29   : > { %s1166_s17 = smov 128   ;;  %s1167_s19 = smov 8  }
  0x2a   : > { %915 = dma.hbm_to_vmem [thread:$0]  (!%p1278_p11), %s1499_s1, 2048, %s1271_s15, [#allocation7], %s1166_s17, %s1166_s17, %s1167_s19  }
  0x2b   : > { %s1018_s30 = scalar_lea.hbm %s1501_s3, 2048 }
  0x2c   : > { %p1019_p1 = scmp.ne.s32.totalorder %s1501_s3, %s1018_s30  ;;  %p1025_p10 = scmp.lt.u32.totalorder %s1018_s30, %s1501_s3 }
  0x2e   : > { %p1021_p4 = pnand %p1019_p1, %p992_p13 }
  0x30   : > { %p1022_p6 = pneg %p1021_p4 }
  0x32   : > { %p1027_p3 = pnand %p1025_p10, %p1022_p6 }
  0x34   : > { %1030 = shalt.err (!%p1027_p3)
}
  0x35   : > { %s1031_s15 = scalar_lea.vmem %s1282_s18, 2048  ;;  %p1039_p12 = scmp.lt.s32.totalorder %s1282_s18, %s1282_s18 }
  0x36   : > { %p1032_p5 = scmp.ne.s32.totalorder %s1282_s18, %s1031_s15  ;;  %p1040_p0 = scmp.lt.s32.totalorder %s1031_s15, %s1031_s15 }
  0x38   : > { %p1034_p7 = pnand %p1032_p5, %p992_p13  ;;  %p1041_p1 = por %p1040_p0, %p1039_p12 }
  0x3a   : > { %p1035_p9 = pneg %p1034_p7 }
  0x3c   : > { %p1042_p4 = pnand %p1041_p1, %p1035_p9 }
  0x3e   : > { %1045 = shalt.err (!%p1042_p4)
}
  0x3f   : > { %918 = dma.hbm_to_vmem [thread:$0]  (!%p1278_p11), %s1501_s3, 2048, %s1282_s18, [#allocation7], %s1166_s17, %s1166_s17, %s1167_s19  }
  0x40   : > { %s36_s20 = sadd.s32 1, %s1158_s28  ;;  %s43_s21 = sadd.s32 1, %s1150_s26 }
  0x41   : > { %p38_p13 = scmp.ge.s32.totalorder %s36_s20, 2  ;;  %p50_p6 = scmp.ne.s32.totalorder %s1150_s26, %s1146_s25 }
  0x42   : > { %p51_p10 = scmp.eq.s32.totalorder %s1162_s29, 0  ;;  %p929_p3 = scmp.lt.s32.totalorder %s1162_s29, 2 }
  0x43   : > { %s1535_s20 = smov (%p38_p13, %s36_s20), 0  ;;  %p1346_p7 = por %p1251_p2, %p50_p6 }
  0x44   : > { %p52_p5 = por %p51_p10, %p50_p6  ;;  %s40_s22 = ssub.s32 %s1158_s28, %s1535_s20 }
  0x45   : > { %s1520_s16 = scalar_select %p1346_p7, 1, 0 }
  0x46   : > { %s293_s23 = sand.u32 1, %s1150_s26   ;;  %p41_p9 = scmp.eq.s32.totalorder %s40_s22, 0 }
  0x47   : > { %s733_s18 = sshll.u32 %s293_s23, 3  ;;  %s734_s17 = sshll.u32 %s1158_s28, 7 }
  0x48   : > { %s1355_s19 = scalar_select %p41_p9, %s1150_s26, %s43_s21  }
  0x49   : > { %s1360_s14 = scalar_lea.hbm %s1498_s0, %s734_s17  ;;  %s297_s10 = scalar_lea.vmem [#allocation3], %s733_s18 }
  0x4a   : > { %s304_s15 = sshll.u32 %s297_s10, 4  ;;  %p1364_p2 = pnand %p929_p3, %p52_p5  ;;  %s1368_s15 = int_to_ptr.vmem [resolvable:$true] %s304_s15 }
  0x4b   : > { %s294_s12 = scalar_lea.sflag [#allocation4], %s293_s23  ;;  %s1046_s21 = scalar_lea.hbm %s1360_s14, 128 }
  0x4c   : > { %p1047_p11 = scmp.ne.s32.totalorder %s1360_s14, %s1046_s21  ;;  %p1048_p12 = pneg %p1364_p2 }
  0x4d   : > { %s1051_s17 = scalar_lea.hbm %s1498_s0, 256  ;;  %p1052_p4 = scmp.lt.u32.totalorder %s1360_s14, %s1498_s0 }
  0x4e   : > { %p1049_p0 = pnand %p1048_p12, %p1047_p11  ;;  %p1053_p13 = scmp.lt.u32.totalorder %s1051_s17, %s1046_s21 }
  0x4f   : > { %p1055_p10 = scmp.lt.u32.totalorder %s1046_s21, %s1360_s14 }
  0x50   : > { %p1050_p1 = pneg %p1049_p0  ;;  %p1054_p6 = por %p1053_p13, %p1052_p4 }
  0x52   : > { %p1056_p3 = por %p1055_p10, %p1054_p6 }
  0x54   : > { %p1057_p5 = pnand %p1056_p3, %p1050_p1 }
  0x56   : > { %1060 = shalt.err (!%p1057_p5)
}
  0x57   : > { %s1061_s23 = scalar_lea.vmem %s1368_s15, 128  ;;  %s1168_s10 = smov [#allocation3]  }
  0x58   : > { %p1062_p9 = scmp.ne.s32.totalorder %s1368_s15, %s1061_s23  ;;  %s1066_s22 = sshll.u32 %s1168_s10, 4  ;;  %s1067_s22 = int_to_ptr.vmem [resolvable:$false] %s1066_s22 }
  0x59   : > { %s1068_s18 = scalar_lea.vmem %s1067_s22, 256  ;;  %p1069_p7 = scmp.lt.s32.totalorder %s1368_s15, %s1067_s22 }
  0x5a   : > { %p1064_p11 = pnand %p1062_p9, %p1048_p12  ;;  %p1070_p4 = scmp.lt.s32.totalorder %s1068_s18, %s1061_s23 }
  0x5c   : > { %p1065_p0 = pneg %p1064_p11  ;;  %p1071_p13 = por %p1070_p4, %p1069_p7 }
  0x5e   : > { %p1072_p6 = pnand %p1071_p13, %p1065_p0 }
  0x60   : > { %1075 = shalt.err (!%p1072_p6)
}
  0x61   : > { %922 = dma.hbm_to_vmem [thread:$0]  (!%p1364_p2), %s1360_s14, 128, %s1368_s15, %s294_s12  }
  0x62   : > { %313 = sbr.rel (%p1267_p8) target bundleno = 902 (0x386), region = 48  ;;  %s1398_s21 = sand.u32 (!%p1267_p8), 1, %s1146_s25  }
  0x63   : > { %s736_s17 = sshll.u32 (!%p1267_p8), %s1398_s21, 3  ;;  %s316_s30 = scalar_lea.sflag (!%p1267_p8), [#allocation4], %s1398_s21 }
  0x64   : > { %s1404_s8 = scalar_lea.vmem (!%p1267_p8), [#allocation3], %s736_s17  ;;  %p1522_p7 = scmp.ne.s32.totalorder (!%p1267_p8), %s1515_s11, 0 }
  0x69   : > { %1129 = dma.done.wait (%p1522_p7), %s316_s30, 128  }
  0x6a   : > { %1131 = vsyncadd (%p1522_p7), %s316_s30, 4294967168  ;;  %p1523_p2 = scmp.ne.s32.totalorder %s1513_s9, 0 }
  0x6c   : > { %1133 = dma.done.wait (%p1523_p2), [#allocation7], 4096  }
  0x6d   : > { %1135 = vsyncadd (%p1523_p2), [#allocation7], 4294963200  ;;  %v1169_v0 = vmov 0.0|0.0   ;;  %vm1170_vm0 = vmmov 0   ;;  %v1171_v1 = vmov 0.0   ;;  %v371_v2 = vld [vmem:[#allocation6] sm:$0xff]  ;;  %v571_v61 = vlaneseq }
  0x6e   : > { %852 = vmatprep.subr.bf16.mxu0 %v1169_v0  ;;  %814 = vmatprep.mubr.msk.f32.mxu0 %vm1170_vm0, %v1171_v1  ;;  %v372_v3 = vld [vmem:[#allocation6 + $0x8] sm:$0xff]  ;;  %v373_v4 = vld [vmem:[#allocation6 + $0x10] sm:$0xff]  ;;  %v374_v6 = vld [vmem:[#allocation6 + $0x18] sm:$0xff]  ;;  %s745_s10 = sshll.u32 %s1154_s27, 7  ;;  %s360_s22 = scalar_lea.vmem [#allocation9], %s736_s17 }
  0x6f   : > { %876 = vmatprep.subr.bf16.mxu1 %v1169_v0  ;;  %849 = vmatprep.mubr.msk.f32.mxu1 %vm1170_vm0, %v1171_v1  ;;  %v853_v5 = vpack.c.bf16 %v372_v3, %v371_v2  ;;  %v856_v7 = vpack.c.bf16 %v374_v6, %v373_v4  ;;  %v375_v8 = vld [vmem:[#allocation6 + $0x20] sm:$0xff]  ;;  %v376_v9 = vld [vmem:[#allocation6 + $0x28] sm:$0xff]  ;;  %v468_v12 = vld [vmem:[#allocation8 + $0x10] sm:$0xff]  ;;  %v572_v62 = vand.u32 127, %v571_v61  ;;  %s613_s18 = sshll.u32 %s360_s22, 4  ;;  %s1449_s9 = scalar_lea.hbm %s1505_s7, %s745_s10  ;;  %s1451_s18 = int_to_ptr.vmem [resolvable:$true] %s613_s18 }
  0x70   : > { %v466_v10 = vld [vmem:[#allocation8] sm:$0xff]  ;;  %v467_v11 = vld [vmem:[#allocation8 + $0x8] sm:$0xff]  ;;  %v469_v13 = vld [vmem:[#allocation8 + $0x18] sm:$0xff]  ;;  %v859_v14 = vpack.c.bf16 %v376_v9, %v375_v8  ;;  %s600_s11 = scalar_lea.sflag [#allocation5], %s1398_s21  ;;  %s1076_s13 = scalar_lea.vmem %s1451_s18, 128 }
  0x71   : > { %854 = vmatpush3.bf16.msra.mxu0 %v853_v5  ;;  %v877_v15 = vpack.c.bf16 %v467_v11, %v466_v10  ;;  %v377_v16 = vld [vmem:[#allocation6 + $0x30] sm:$0xff]  ;;  %v378_v17 = vld [vmem:[#allocation6 + $0x38] sm:$0xff]  ;;  %v880_v18 = vpack.c.bf16 %v469_v13, %v468_v12  ;;  %v470_v19 = vld [vmem:[#allocation8 + $0x20] sm:$0xff]  ;;  %vm573_vm1 = vcmp.lt.s32.totalorder %v572_v62, 32  ;;  %p1077_p8 = scmp.ne.s32.totalorder %s1451_s18, %s1076_s13  ;;  %p1524_p12 = scmp.ne.s32.totalorder %s1520_s16, 0 }
  0x72   : > { %855 = vmatprep.subr.bf16.mxu0 %v1169_v0  ;;  %v471_v20 = vld [vmem:[#allocation8 + $0x28] sm:$0xff]  ;;  %v862_v21 = vpack.c.bf16 %v378_v17, %v377_v16  ;;  %v379_v22 = vld [vmem:[#allocation6 + $0x40] sm:$0xff]  ;;  %v472_v25 = vld [vmem:[#allocation8 + $0x30] sm:$0xff]  ;;  %s1172_s27 = smov [#allocation9]  }
  0x73   : > { %878 = vmatpush3.bf16.msra.mxu1 %v877_v15  ;;  %v380_v23 = vld [vmem:[#allocation6 + $0x48] sm:$0xff]  ;;  %v883_v24 = vpack.c.bf16 %v471_v20, %v470_v19  ;;  %v473_v26 = vld [vmem:[#allocation8 + $0x38] sm:$0xff]  ;;  %v381_v28 = vld [vmem:[#allocation6 + $0x50] sm:$0xff]  ;;  %p1078_p1 = pnand %p1077_p8, %p1524_p12  ;;  %s1080_s17 = sshll.u32 %s1172_s27, 4  ;;  %s1081_s17 = int_to_ptr.vmem [resolvable:$false] %s1080_s17 }
  0x74   : > { %879 = vmatprep.subr.bf16.mxu1 %v1169_v0  ;;  %v865_v27 = vpack.c.bf16 %v380_v23, %v379_v22  ;;  %v382_v29 = vld [vmem:[#allocation6 + $0x58] sm:$0xff]  ;;  %v886_v30 = vpack.c.bf16 %v473_v26, %v472_v25  ;;  %v474_v31 = vld [vmem:[#allocation8 + $0x40] sm:$0xff]  ;;  %v475_v32 = vld [vmem:[#allocation8 + $0x48] sm:$0xff]  ;;  %s1082_s14 = scalar_lea.vmem %s1081_s17, 256  ;;  %p1083_p3 = scmp.lt.s32.totalorder %s1451_s18, %s1081_s17 }
  0x75   : > { %857 = vmatpush3.bf16.msra.mxu0 %v856_v7  ;;  %v868_v33 = vpack.c.bf16 %v382_v29, %v381_v28  ;;  %v383_v34 = vld [vmem:[#allocation6 + $0x60] sm:$0xff]  ;;  %v384_v35 = vld [vmem:[#allocation6 + $0x68] sm:$0xff]  ;;  %v889_v36 = vpack.c.bf16 %v475_v32, %v474_v31  ;;  %v476_v37 = vld [vmem:[#allocation8 + $0x50] sm:$0xff]  ;;  %p1079_p10 = pneg %p1078_p1  ;;  %p1084_p5 = scmp.lt.s32.totalorder %s1082_s14, %s1076_s13 }
  0x76   : > { %858 = vmatprep.subr.bf16.mxu0 %v1169_v0  ;;  %v477_v38 = vld [vmem:[#allocation8 + $0x58] sm:$0xff]  ;;  %v871_v39 = vpack.c.bf16 %v384_v35, %v383_v34  ;;  %v385_v40 = vld [vmem:[#allocation6 + $0x70] sm:$0xff]  ;;  %v478_v43 = vld [vmem:[#allocation8 + $0x60] sm:$0xff] }
  0x77   : > { %881 = vmatpush3.bf16.msra.mxu1 %v880_v18  ;;  %v386_v41 = vld [vmem:[#allocation6 + $0x78] sm:$0xff]  ;;  %v892_v42 = vpack.c.bf16 %v477_v38, %v476_v37  ;;  %v479_v44 = vld [vmem:[#allocation8 + $0x68] sm:$0xff]  ;;  %v480_v48 = vld [vmem:[#allocation8 + $0x70] sm:$0xff]  ;;  %p1085_p9 = por %p1084_p5, %p1083_p3 }
  0x78   : > { %882 = vmatprep.subr.bf16.mxu1 %v1169_v0  ;;  %v874_v45 = vpack.c.bf16 %v386_v41, %v385_v40  ;;  %v895_v46 = vpack.c.bf16 %v479_v44, %v478_v43  ;;  %v370_v47 = vld [vmem:[%s1404_s8] sm:$0xff] }
  0x79   : > { %860 = vmatpush3.bf16.msra.mxu0 %v859_v14  ;;  %v481_v49 = vld [vmem:[#allocation8 + $0x78] sm:$0xff]  ;;  %v740_v51 = vld [vmem:[%s1500_s2] ss:$0 sm:$0xff]  ;;  %p1086_p11 = pnand %p1085_p9, %p1079_p10 }
  0x7a   : > { %861 = vmatprep.subr.bf16.mxu0 %v1169_v0  ;;  %v898_v50 = vpack.c.bf16 %v481_v49, %v480_v48  ;;  %v741_v57 = vld [vmem:[%s1502_s4] ss:$0 sm:$0xff] }
  0x7b   : > { %884 = vmatpush3.bf16.msra.mxu1 %v883_v24  ;;  %v742_v8 = vld [vmem:[%s1503_s5] ss:$0 sm:$0xff] }
  0x7c   : > { %885 = vmatprep.subr.bf16.mxu1 %v1169_v0  ;;  %v743_v10 = vld [vmem:[%s1504_s6] ss:$0 sm:$0xff] }
  0x7d   : > { %863 = vmatpush3.bf16.msra.mxu0 %v862_v21 }
  0x7e   : > { %864 = vmatprep.subr.bf16.mxu0 %v1169_v0 }
  0x7f   : > { %887 = vmatpush3.bf16.msra.mxu1 %v886_v30 }
  0x80   : > { %888 = vmatprep.subr.bf16.mxu1 %v1169_v0 }
  0x81   : > { %866 = vmatpush3.bf16.msra.mxu0 %v865_v27 }
  0x82   : > { %867 = vmatprep.subr.bf16.mxu0 %v1169_v0 }
  0x83   : > { %890 = vmatpush3.bf16.msra.mxu1 %v889_v36 }
  0x84   : > { %891 = vmatprep.subr.bf16.mxu1 %v1169_v0 }
  0x85   : > { %869 = vmatpush3.bf16.msra.mxu0 %v868_v33 }
  0x86   : > { %870 = vmatprep.subr.bf16.mxu0 %v1169_v0 }
  0x87   : > { %893 = vmatpush3.bf16.msra.mxu1 %v892_v42 }
  0x88   : > { %894 = vmatprep.subr.bf16.mxu1 %v1169_v0 }
  0x89   : > { %872 = vmatpush3.bf16.msra.mxu0 %v871_v39 }
  0x8a   : > { %873 = vmatprep.subr.bf16.mxu0 %v1169_v0 }
  0x8b   : > { %896 = vmatpush3.bf16.msra.mxu1 %v895_v46 }
  0x8c   : > { %897 = vmatprep.subr.bf16.mxu1 %v1169_v0 }
  0x8d   : > { %875 = vmatpush3.bf16.msra.mxu0 %v874_v45 }
  0x8f   : > { %899 = vmatpush3.bf16.msra.mxu1 %v898_v50 }
  0x90   : > { %815 = vmatmul.mubr.f32.vlgmr.msra.gmra.mrb[0].mxu0 %v370_v47 }
 0x163   : > { %v460_v52 = vpop.f32.mrb[0].mxu0 }
 0x164   : > { %v461_v53 = vadd.f32 %v740_v51, %v460_v52  ;;  %v816_v54 = vpop.f32.mrb[1].mxu0 }
 0x166   : > { %v464_v55 = vmax.f32 %v461_v53, 0.0 }
 0x168   : > { %850 = vmatmul.mubr.f32.vlgmr.msra.gmra.mrb[0].mxu1 %v464_v55 }
 0x23b   : > { %v548_v56 = vpop.f32.mrb[0].mxu1 }
 0x23c   : > { %v558_v58 = vadd.f32 %v548_v56, %v370_v47  ;;  %v851_v59 = vpop.f32.mrb[1].mxu1 }
 0x23e   : > { %v566_v60 = vadd.f32 %v741_v57, %v558_v58 }
 0x240   : > { %567 = vadd.xlane.f32.xlu0 %v566_v60 }
 0x2cd   : > { %v568_v63 = vpop.xlane.xlu0 %567 }
 0x2ce   : > { %v569_v0 = vmul.f32 0.03125, %v568_v63 }
 0x2d0   : > { %v570_v1 = vsub.f32 %v566_v60, %v569_v0 }
 0x2d2   : > { %v574_v2 = vsel %vm573_vm1, %v570_v1, 0.0 }
 0x2d3   : > { %v575_v3 = vmul.f32 %v574_v2, %v574_v2 }
 0x2d5   : > { %576 = vadd.xlane.f32.xlu0 %v575_v3 }
 0x362   : > { %v577_v4 = vpop.xlane.xlu0 %576 }
 0x363   : > { %v578_v5 = vmul.f32 0.03125, %v577_v4 }
 0x365   : > { %v579_v6 = vadd.f32 1e-05, %v578_v5 }
 0x367   : > { %988 = vrsqrt.f32 %v579_v6 }
 0x371   : > { %v989_v7 = vpop.eup %988 }
 0x372   : > { %v581_v9 = vmul.f32 %v989_v7, %v570_v1 }
 0x374   : > { %v589_v11 = vmul.f32 %v742_v8, %v581_v9 }
 0x376   : > { %v597_v12 = vadd.f32 %v743_v10, %v589_v11 }
 0x378   : > { %598 = vst [vmem:[%s360_s22] sm:$0xff] %v597_v12 }
 0x379   : > { %1089 = shalt.err (!%p1086_p11)
}
 0x37a   : > { %s1090_s21 = scalar_lea.hbm %s1449_s9, 128  ;;  %s1094_s12 = scalar_lea.hbm %s1505_s7, 256 }
 0x37b   : > { %p1091_p0 = scmp.ne.s32.totalorder %s1449_s9, %s1090_s21  ;;  %p1095_p6 = scmp.lt.u32.totalorder %s1449_s9, %s1505_s7 }
 0x37c   : > { %p1096_p7 = scmp.lt.u32.totalorder %s1094_s12, %s1090_s21  ;;  %p1098_p8 = scmp.lt.u32.totalorder %s1090_s21, %s1449_s9 }
 0x37d   : > { %p1092_p4 = pnand %p1091_p0, %p1524_p12 }
 0x37e   : > { %p1097_p2 = por %p1096_p7, %p1095_p6 }
 0x37f   : > { %p1093_p13 = pneg %p1092_p4 }
 0x380   : > { %p1099_p1 = por %p1098_p8, %p1097_p2 }
 0x382   : > { %p1100_p10 = pnand %p1099_p1, %p1093_p13 }
 0x384   : > { %1103 = shalt.err (!%p1100_p10)
}
 0x385   : > { %910 = dma.vmem_to_hbm [thread:$0]  (%p1524_p12), %s1451_s18, 128, %s1449_s9, %s600_s11  }
 0x386 PF: > { %s1525_s22 = sld [smem:[#allocation13_spill]]  ;;  %s1526_s30 = sld [smem:[#allocation14_spill]] }
 0x387   : > { %p1528_p5 = scmp.ge.s32.totalorder %s1162_s29, 2 }
 0x38c   : > { %s625_s8 = sand.u32 1, %s1525_s22   ;;  %p1527_p3 = scmp.ne.s32.totalorder %s1526_s30, 0 }
 0x38d   : > { %s626_s13 = scalar_lea.sflag [#allocation5], %s625_s8 }
 0x38e   : > { %p924_p9 = pnand %p1528_p5, %p1527_p3 }
 0x390   : > { %1137 = dma.done.wait (!%p924_p9), %s626_s13, 128  }
 0x391   : > { %1139 = vsyncadd (!%p924_p9), %s626_s13, 4294967168  ;;  %s24_s29 = sadd.s32 1, %s1162_s29   ;;  %s1529_s24 = smov %s1146_s25 }
 0x392   : > { %p21_p11 = scmp.ge.s32.totalorder %s24_s29, 4   ;;  %s1530_s25 = smov %s1150_s26 }
 0x393   : > { %s1531_s26 = smov %s1355_s19  ;;  %s1532_s27 = smov %s1158_s28 }
 0x394   : > { %s1533_s28 = smov %s1535_s20  ;;  %23 = sbr.rel (!%p21_p11) target bundleno = 7 (0x7), region = 114 }
 0x39b   :  { %631 = vsyncpa [#allocation4], 1 }
 0x39c   :  { %633 = vsyncpa [#allocation4 + $0x1], 1 }
 0x39d   :  { %634 = vsyncpa [#allocation7], 1 }
 0x39e   :  { %635 = vsyncpa [#allocation5], 1 }
 0x39f   :  { %637 = vsyncpa [#allocation5 + $0x1], 1 }

</bundles_post_ra>
